<compile_context>
chip_gen: v7x
topology: tpu7x:2x2x1
jax: 0.10.0
libtpu: 0.0.40
codegen_flags: <defaults>
</compile_context>

<pallas_src>
import functools

import jax
import jax.numpy as jnp
from jax.experimental import pallas as pl
from jax.experimental.pallas import tpu as pltpu


# ---------------------------------------------------------------------------
# VMEM budgeting (per TPU generation).
# ---------------------------------------------------------------------------
def _vmem_budget_bytes():
    """Working-set budget for one grid step.

    v5e/v6e have 128 MiB of VMEM per core (scoped defaults 16/32 MiB); v7x has
    only 64 MiB per TensorCore.  Keep the pipelined working set comfortably
    under the 32 MiB scoped limit we request via vmem_limit_bytes.
    """
    try:
        cap = pltpu.get_tpu_info().vmem_capacity_bytes
    except Exception:  # hardware info unavailable -> assume the smallest (v7x)
        cap = 64 * 1024 * 1024
    return int(min(20 * 1024 * 1024, cap // 4))


def _pick_plane_block(planes, per_plane_bytes, budget):
    """How many (n, c) planes to process per grid step.

    The plane count is the second-minor dim of every block, so it must be a
    multiple of 8 (sublane tile) or cover all planes.  Prefer the largest
    aligned block that fits the budget; when divisibility allows, keep >= 2
    (even) grid steps so both v7x TensorCores get work.
    """
    if planes <= 8 or planes % 8:
        return planes                      # single full block
    pb = min(planes, max(8, budget // max(per_plane_bytes, 1)))
    pb -= pb % 8
    while planes % pb:                     # largest multiple-of-8 divisor
        pb -= 8
    if planes // pb == 1 and planes % 16 == 0:
        pb = planes // 2                   # 2 even grid steps for v7x's 2 TCs
    return pb
    # TODO(synk): very large C*H*W would additionally need a spatial grid axis.


# ---------------------------------------------------------------------------
# stride == 1, odd kernel: flattened-plane shift+mask formulation.
# ---------------------------------------------------------------------------
def _make_tap_masks(h, w, k, pad):
    """Float masks (k*k, H*W): 1.0 where tap (kh, kw) reads inside the image."""
    ho = jnp.arange(h).reshape(h, 1)
    wo = jnp.arange(w).reshape(1, w)
    rows = []
    for kh in range(k):
        for kw in range(k):
            valid_h = (ho + kh - pad >= 0) & (ho + kh - pad <= h - 1)
            valid_w = (wo + kw - pad >= 0) & (wo + kw - pad <= w - 1)
            rows.append((valid_h & valid_w).astype(jnp.float32).reshape(h * w))
    return jnp.stack(rows, axis=0)


def _depthconv_s1_kernel(x_ref, w_ref, m_ref, o_ref, *, k, pad, w, hw):
    # x_ref : (PB, H*W)   flattened (n, c) planes, native NCHW order
    # w_ref : (PB, K*K)   per-plane tap weights (f32)
    # m_ref : (K*K, H*W)  per-tap boundary masks (f32), constant across steps
    # o_ref : (PB, H*W)   lane-dense output store
    x = x_ref[...].astype(jnp.float32)          # single up-front widen (v5e)
    acc = jnp.zeros(x.shape, jnp.float32)
    t = 0
    for kh in range(k):
        for kw in range(k):
            off = (kh - pad) * w + (kw - pad)
            wv = w_ref[:, t:t + 1]              # (PB, 1) -> lane broadcast
            if off == 0:
                # centre tap: no shift, mask is all-ones
                acc = acc + x * wv
            else:
                # per-tap shift on the XLU; boundary lanes killed by the mask
                shifted = pltpu.roll(x, shift=(-off) % hw, axis=1)
                acc = acc + shifted * m_ref[t:t + 1, :] * wv
            t += 1
    o_ref[...] = acc.astype(o_ref.dtype)


def _depth_conv_s1(x, weight, *, kernel_size):
    n, c, h, w = x.shape
    k = kernel_size
    pad = k // 2                     # kernel_size * 1 // 2 ; odd k -> same size
    planes = n * c
    hw = h * w

    # Free reshapes (contiguous-dim merges) — no transposes, no HBM round trip.
    x_flat = x.reshape(planes, hw)
    w_planes = jnp.tile(weight[:, 0, :, :].reshape(c, k * k),
                        (n, 1)).astype(jnp.float32)          # (N*C, K*K)
    masks = _make_tap_masks(h, w, k, pad)                     # (K*K, H*W)

    itemsize = jnp.dtype(x.dtype).itemsize
    # 2x double-buffered input + 2x double-buffered output + ~3 f32 temps.
    per_plane = hw * (4 * itemsize + 12)
    pb = _pick_plane_block(planes, per_plane, _vmem_budget_bytes())
    grid = (planes // pb,)

    kernel = functools.partial(_depthconv_s1_kernel, k=k, pad=pad, w=w, hw=hw)

    out_flat = pl.pallas_call(
        kernel,
        out_shape=jax.ShapeDtypeStruct((planes, hw), x.dtype),
        grid_spec=pltpu.PrefetchScalarGridSpec(
            num_scalar_prefetch=0,
            grid=grid,
            in_specs=[
                pl.BlockSpec((pb, hw), lambda b: (b, 0)),
                pl.BlockSpec((pb, k * k), lambda b: (b, 0)),
                # constant block index -> tiny mask slab is fetched once
                pl.BlockSpec((k * k, hw), lambda b: (0, 0)),
            ],
            out_specs=pl.BlockSpec((pb, hw), lambda b: (b, 0)),
        ),
        compiler_params=pltpu.CompilerParams(
            dimension_semantics=("parallel",),
            vmem_limit_bytes=32 * 1024 * 1024,
        ),
    )(x_flat, w_planes, masks)

    return out_flat.reshape(n, c, h, w)


# ---------------------------------------------------------------------------
# Fallback: general stride (or even kernel size).  Grid over channels, halo
# built in VMEM scratch, weights as 1-D SMEM scalars.
# ---------------------------------------------------------------------------
def _depthconv_gen_kernel(x_ref, w_ref, o_ref, xp_ref, *,
                          h_in, w_in, k, pad, stride, h_out, w_out):
    # x_ref : (N, 1, H, W)    all batch planes of one channel
    # w_ref : (C*K*K,)        depthwise weights in SMEM (scalar reads)
    # o_ref : (N, 1, Ho, Wo)
    # xp_ref: (N, Hp, Wp)     zero-padded planes of this channel
    ch = pl.program_id(0)
    xp_ref[...] = jnp.zeros_like(xp_ref)
    xp_ref[:, pad:pad + h_in, pad:pad + w_in] = x_ref[...][:, 0, :, :]
    xp = xp_ref[...].astype(jnp.float32)

    acc = jnp.zeros((xp.shape[0], h_out, w_out), jnp.float32)
    for kh in range(k):
        for kw in range(k):
            patch = xp[:, kh:kh + stride * (h_out - 1) + 1:stride,
                       kw:kw + stride * (w_out - 1) + 1:stride]
            acc = acc + patch * w_ref[ch * k * k + kh * k + kw]
    o_ref[...] = acc[:, None, :, :].astype(o_ref.dtype)


def _depth_conv_general(x, weight, *, kernel_size, stride):
    # TODO(synk): polyphase-decimate stride>1 into the lane-dense stride-1
    # path (per-tap strided slices here force relayouts and ~12% lane use);
    # also tile the batch axis for very large N.
    n, c, h, w = x.shape
    k = kernel_size
    pad = k * stride // 2
    h_out = (h + 2 * pad - k) // stride + 1
    w_out = (w + 2 * pad - k) // stride + 1
    hp, wp = h + 2 * pad, w + 2 * pad

    w_flat = weight[:, 0, :, :].reshape(c * k * k).astype(jnp.float32)

    kernel = functools.partial(
        _depthconv_gen_kernel,
        h_in=h, w_in=w, k=k, pad=pad, stride=stride, h_out=h_out, w_out=w_out)

    return pl.pallas_call(
        kernel,
        out_shape=jax.ShapeDtypeStruct((n, c, h_out, w_out), x.dtype),
        grid_spec=pltpu.PrefetchScalarGridSpec(
            num_scalar_prefetch=0,
            grid=(c,),
            in_specs=[
                pl.BlockSpec((n, 1, h, w), lambda ci: (0, ci, 0, 0)),
                pl.BlockSpec(memory_space=pltpu.MemorySpace.SMEM),
            ],
            out_specs=pl.BlockSpec((n, 1, h_out, w_out),
                                   lambda ci: (0, ci, 0, 0)),
            scratch_shapes=[pltpu.VMEM((n, hp, wp), x.dtype)],
        ),
        compiler_params=pltpu.CompilerParams(
            dimension_semantics=("parallel",),
            vmem_limit_bytes=32 * 1024 * 1024,
        ),
    )(x, w_flat)


# ---------------------------------------------------------------------------
# Public entry points.
# ---------------------------------------------------------------------------
def depth_conv(x, weight, *, kernel_size, stride):
    """Depthwise conv2d matching
    nn.Conv2d(c, c, kernel_size, stride, padding=kernel_size*stride//2,
              groups=c, bias=False).

    x:      (N, C, H, W)
    weight: (C, 1, KH, KW)  (PyTorch depthwise layout)
    """
    if stride == 1 and kernel_size % 2 == 1:
        return _depth_conv_s1(x, weight, kernel_size=kernel_size)
    return _depth_conv_general(x, weight, kernel_size=kernel_size, stride=stride)


def depth_conv_reference(x, weight, *, kernel_size, stride):
    """Pure-JAX reference (lax depthwise conv) for correctness checking."""
    c = x.shape[1]
    pad = kernel_size * stride // 2
    return jax.lax.conv_general_dilated(
        x,
        weight,  # (C, 1, KH, KW) with feature_group_count=C
        window_strides=(stride, stride),
        padding=((pad, pad), (pad, pad)),
        dimension_numbers=("NCHW", "OIHW", "NCHW"),
        feature_group_count=c,
    )


if __name__ == "__main__":
    # DepthConv(c=4, kernel_size=3, padding=<ignored>, stride=1) -> pad = 1
    N, C, H, W = 2, 4, 16, 16
    KERNEL_SIZE = 3
    STRIDE = 1

    key = jax.random.PRNGKey(0)
    kx, kw = jax.random.split(key)
    x = jax.random.normal(kx, (N, C, H, W), dtype=jnp.float32)
    weight = jax.random.normal(kw, (C, 1, KERNEL_SIZE, KERNEL_SIZE),
                               dtype=jnp.float32) * 0.1

    out = depth_conv(x, weight, kernel_size=KERNEL_SIZE, stride=STRIDE)
    out = jax.block_until_ready(out)

    ref = depth_conv_reference(x, weight, kernel_size=KERNEL_SIZE, stride=STRIDE)
    ref = jax.block_until_ready(ref)

    assert out.shape == ref.shape, (out.shape, ref.shape)
    assert jnp.allclose(out, ref, atol=1e-5, rtol=1e-5), \
        float(jnp.max(jnp.abs(out - ref)))

    print("KERNEL_OK")
</pallas_src>

<mosaic_0001>
module attributes {stable_mosaic.version = 11 : i64} {
  func.func @_depthconv_s1_kernel(%arg0: i32, %arg1: memref<8x256xf32, #tpu.memory_space<vmem>>, %arg2: memref<8x9xf32, #tpu.memory_space<vmem>>, %arg3: memref<9x256xf32, #tpu.memory_space<vmem>>, %arg4: memref<8x256xf32, #tpu.memory_space<vmem>>) attributes {dimension_semantics = [#tpu.dimension_semantics<parallel>], iteration_bounds = array<i64: 1>, scalar_prefetch = 0 : i64, scratch_operands = 0 : i64, tpu.core_type = #tpu.core_type<tc>, window_params = [{transform_indices = @transform_0, window_bounds = array<i64: 8, 256>}, {transform_indices = @transform_1, window_bounds = array<i64: 8, 9>}, {pipeline_mode = #tpu.pipeline_mode<synchronous>, transform_indices = @transform_2, window_bounds = array<i64: 9, 256>}, {transform_indices = @transform_3, window_bounds = array<i64: 8, 256>}]} {
    %c0 = arith.constant 0 : index
    %c0_0 = arith.constant 0 : index
    %0 = vector.load %arg1[%c0, %c0_0] : memref<8x256xf32, #tpu.memory_space<vmem>>, vector<8x256xf32>
    %cst = arith.constant 0.000000e+00 : f32
    %1 = vector.broadcast %cst : f32 to vector<8x256xf32>
    %c0_1 = arith.constant 0 : index
    %c0_2 = arith.constant 0 : index
    %2 = vector.load %arg2[%c0_1, %c0_2] : memref<8x9xf32, #tpu.memory_space<vmem>>, vector<8x1xf32>
    %c17_i32 = arith.constant 17 : i32
    %3 = tpu.dynamic_rotate %0 by %c17_i32 dim 1 : vector<8x256xf32>, i32 -> vector<8x256xf32>
    %c0_3 = arith.constant 0 : index
    %c0_4 = arith.constant 0 : index
    %4 = vector.load %arg3[%c0_3, %c0_4] : memref<9x256xf32, #tpu.memory_space<vmem>>, vector<1x256xf32>
    %5 = vector.broadcast %4 : vector<1x256xf32> to vector<8x256xf32>
    %6 = arith.mulf %3, %5 : vector<8x256xf32>
    %7 = vector.broadcast %2 : vector<8x1xf32> to vector<8x256xf32>
    %8 = arith.mulf %6, %7 : vector<8x256xf32>
    %9 = arith.addf %1, %8 : vector<8x256xf32>
    %c0_5 = arith.constant 0 : index
    %c1 = arith.constant 1 : index
    %10 = vector.load %arg2[%c0_5, %c1] : memref<8x9xf32, #tpu.memory_space<vmem>>, vector<8x1xf32>
    %c16_i32 = arith.constant 16 : i32
    %11 = tpu.dynamic_rotate %0 by %c16_i32 dim 1 : vector<8x256xf32>, i32 -> vector<8x256xf32>
    %c1_6 = arith.constant 1 : index
    %c0_7 = arith.constant 0 : index
    %12 = vector.load %arg3[%c1_6, %c0_7] : memref<9x256xf32, #tpu.memory_space<vmem>>, vector<1x256xf32>
    %13 = vector.broadcast %12 : vector<1x256xf32> to vector<8x256xf32>
    %14 = arith.mulf %11, %13 : vector<8x256xf32>
    %15 = vector.broadcast %10 : vector<8x1xf32> to vector<8x256xf32>
    %16 = arith.mulf %14, %15 : vector<8x256xf32>
    %17 = arith.addf %9, %16 : vector<8x256xf32>
    %c0_8 = arith.constant 0 : index
    %c2 = arith.constant 2 : index
    %18 = vector.load %arg2[%c0_8, %c2] : memref<8x9xf32, #tpu.memory_space<vmem>>, vector<8x1xf32>
    %c15_i32 = arith.constant 15 : i32
    %19 = tpu.dynamic_rotate %0 by %c15_i32 dim 1 : vector<8x256xf32>, i32 -> vector<8x256xf32>
    %c2_9 = arith.constant 2 : index
    %c0_10 = arith.constant 0 : index
    %20 = vector.load %arg3[%c2_9, %c0_10] : memref<9x256xf32, #tpu.memory_space<vmem>>, vector<1x256xf32>
    %21 = vector.broadcast %20 : vector<1x256xf32> to vector<8x256xf32>
    %22 = arith.mulf %19, %21 : vector<8x256xf32>
    %23 = vector.broadcast %18 : vector<8x1xf32> to vector<8x256xf32>
    %24 = arith.mulf %22, %23 : vector<8x256xf32>
    %25 = arith.addf %17, %24 : vector<8x256xf32>
    %c0_11 = arith.constant 0 : index
    %c3 = arith.constant 3 : index
    %26 = vector.load %arg2[%c0_11, %c3] : memref<8x9xf32, #tpu.memory_space<vmem>>, vector<8x1xf32>
    %c1_i32 = arith.constant 1 : i32
    %27 = tpu.dynamic_rotate %0 by %c1_i32 dim 1 : vector<8x256xf32>, i32 -> vector<8x256xf32>
    %c3_12 = arith.constant 3 : index
    %c0_13 = arith.constant 0 : index
    %28 = vector.load %arg3[%c3_12, %c0_13] : memref<9x256xf32, #tpu.memory_space<vmem>>, vector<1x256xf32>
    %29 = vector.broadcast %28 : vector<1x256xf32> to vector<8x256xf32>
    %30 = arith.mulf %27, %29 : vector<8x256xf32>
    %31 = vector.broadcast %26 : vector<8x1xf32> to vector<8x256xf32>
    %32 = arith.mulf %30, %31 : vector<8x256xf32>
    %33 = arith.addf %25, %32 : vector<8x256xf32>
    %c0_14 = arith.constant 0 : index
    %c4 = arith.constant 4 : index
    %34 = vector.load %arg2[%c0_14, %c4] : memref<8x9xf32, #tpu.memory_space<vmem>>, vector<8x1xf32>
    %35 = vector.broadcast %34 : vector<8x1xf32> to vector<8x256xf32>
    %36 = arith.mulf %0, %35 : vector<8x256xf32>
    %37 = arith.addf %33, %36 : vector<8x256xf32>
    %c0_15 = arith.constant 0 : index
    %c5 = arith.constant 5 : index
    %38 = vector.load %arg2[%c0_15, %c5] : memref<8x9xf32, #tpu.memory_space<vmem>>, vector<8x1xf32>
    %c255_i32 = arith.constant 255 : i32
    %39 = tpu.dynamic_rotate %0 by %c255_i32 dim 1 : vector<8x256xf32>, i32 -> vector<8x256xf32>
    %c5_16 = arith.constant 5 : index
    %c0_17 = arith.constant 0 : index
    %40 = vector.load %arg3[%c5_16, %c0_17] : memref<9x256xf32, #tpu.memory_space<vmem>>, vector<1x256xf32>
    %41 = vector.broadcast %40 : vector<1x256xf32> to vector<8x256xf32>
    %42 = arith.mulf %39, %41 : vector<8x256xf32>
    %43 = vector.broadcast %38 : vector<8x1xf32> to vector<8x256xf32>
    %44 = arith.mulf %42, %43 : vector<8x256xf32>
    %45 = arith.addf %37, %44 : vector<8x256xf32>
    %c0_18 = arith.constant 0 : index
    %c6 = arith.constant 6 : index
    %46 = vector.load %arg2[%c0_18, %c6] : memref<8x9xf32, #tpu.memory_space<vmem>>, vector<8x1xf32>
    %c241_i32 = arith.constant 241 : i32
    %47 = tpu.dynamic_rotate %0 by %c241_i32 dim 1 : vector<8x256xf32>, i32 -> vector<8x256xf32>
    %c6_19 = arith.constant 6 : index
    %c0_20 = arith.constant 0 : index
    %48 = vector.load %arg3[%c6_19, %c0_20] : memref<9x256xf32, #tpu.memory_space<vmem>>, vector<1x256xf32>
    %49 = vector.broadcast %48 : vector<1x256xf32> to vector<8x256xf32>
    %50 = arith.mulf %47, %49 : vector<8x256xf32>
    %51 = vector.broadcast %46 : vector<8x1xf32> to vector<8x256xf32>
    %52 = arith.mulf %50, %51 : vector<8x256xf32>
    %53 = arith.addf %45, %52 : vector<8x256xf32>
    %c0_21 = arith.constant 0 : index
    %c7 = arith.constant 7 : index
    %54 = vector.load %arg2[%c0_21, %c7] : memref<8x9xf32, #tpu.memory_space<vmem>>, vector<8x1xf32>
    %c240_i32 = arith.constant 240 : i32
    %55 = tpu.dynamic_rotate %0 by %c240_i32 dim 1 : vector<8x256xf32>, i32 -> vector<8x256xf32>
    %c7_22 = arith.constant 7 : index
    %c0_23 = arith.constant 0 : index
    %56 = vector.load %arg3[%c7_22, %c0_23] : memref<9x256xf32, #tpu.memory_space<vmem>>, vector<1x256xf32>
    %57 = vector.broadcast %56 : vector<1x256xf32> to vector<8x256xf32>
    %58 = arith.mulf %55, %57 : vector<8x256xf32>
    %59 = vector.broadcast %54 : vector<8x1xf32> to vector<8x256xf32>
    %60 = arith.mulf %58, %59 : vector<8x256xf32>
    %61 = arith.addf %53, %60 : vector<8x256xf32>
    %c0_24 = arith.constant 0 : index
    %c8 = arith.constant 8 : index
    %62 = vector.load %arg2[%c0_24, %c8] : memref<8x9xf32, #tpu.memory_space<vmem>>, vector<8x1xf32>
    %c239_i32 = arith.constant 239 : i32
    %63 = tpu.dynamic_rotate %0 by %c239_i32 dim 1 : vector<8x256xf32>, i32 -> vector<8x256xf32>
    %c8_25 = arith.constant 8 : index
    %c0_26 = arith.constant 0 : index
    %64 = vector.load %arg3[%c8_25, %c0_26] : memref<9x256xf32, #tpu.memory_space<vmem>>, vector<1x256xf32>
    %65 = vector.broadcast %64 : vector<1x256xf32> to vector<8x256xf32>
    %66 = arith.mulf %63, %65 : vector<8x256xf32>
    %67 = vector.broadcast %62 : vector<8x1xf32> to vector<8x256xf32>
    %68 = arith.mulf %66, %67 : vector<8x256xf32>
    %69 = arith.addf %61, %68 : vector<8x256xf32>
    %c0_27 = arith.constant 0 : index
    %c0_28 = arith.constant 0 : index
    %70 = vector.load %arg4[%c0_27, %c0_28] : memref<8x256xf32, #tpu.memory_space<vmem>>, vector<8x256xf32>
    tpu.vector_store %arg4[%c0_27, %c0_28], %69 {strides = array<i32>} : memref<8x256xf32, #tpu.memory_space<vmem>>, vector<8x256xf32>,
    return
  }
  func.func @transform_0(%arg0: i32) -> (i32, i32) {
    %c0_i32 = arith.constant 0 : i32
    %c0_i32_0 = arith.constant 0 : i32
    return %arg0, %c0_i32 : i32, i32
  }
  func.func @transform_1(%arg0: i32) -> (i32, i32) {
    %c0_i32 = arith.constant 0 : i32
    %c0_i32_0 = arith.constant 0 : i32
    return %arg0, %c0_i32 : i32, i32
  }
  func.func @transform_2(%arg0: i32) -> (i32, i32) {
    %c0_i32 = arith.constant 0 : i32
    %c0_i32_0 = arith.constant 0 : i32
    %c0_i32_1 = arith.constant 0 : i32
    return %c0_i32, %c0_i32_0 : i32, i32
  }
  func.func @transform_3(%arg0: i32) -> (i32, i32) {
    %c0_i32 = arith.constant 0 : i32
    %c0_i32_0 = arith.constant 0 : i32
    return %arg0, %c0_i32 : i32, i32
  }
}

</mosaic_0001>

<bundles_post_ra>
// kernel: tpu_custom_call.1
= control target key start
LH: loop header
LB: loop body
LE: loop exit
PB: predicated region body
PF: predicated region fallthrough
CT: control target
= control target key end

     0   :  { %8 = vsyncpa [#allocation3], 0  ;;  %s614_s0 = inlined_call_operand.hbm [shape: f32[8,256], index: 0, kind: input, shape index: {}]   ;;  %s615_s1 = inlined_call_operand.hbm [shape: f32[8,9], index: 1, kind: input, shape index: {}]   ;;  %s616_s2 = inlined_call_operand.hbm [shape: f32[9,256], index: 2, kind: input, shape index: {}]   ;;  %s617_s3 = inlined_call_operand.hbm [shape: f32[8,256], index: 3, kind: output, shape index: {}]  }
   0x1   :  { %9 = vsyncpa [#allocation6], 0 }
   0x2   :  { %10 = vsyncpa [#allocation4], 0  ;;  %s448_s12 = smov [#allocation5]   ;;  %s449_s14 = smov [#allocation2]  }
   0x3   :  { %s27_s13 = sshll.u32 %s448_s12, 4  ;;  %s17_s15 = sshll.u32 %s449_s14, 4  ;;  %s28_s13 = int_to_ptr.vmem [resolvable:$true] %s27_s13  ;;  %s18_s15 = int_to_ptr.vmem [resolvable:$true] %s17_s15 }
   0x4   :  { %s354_s18 = scalar_lea.hbm %s615_s1, 128 }
   0x5   :  { %p355_p0 = scmp.ne.s32.totalorder %s615_s1, %s354_s18  ;;  %p358_p1 = scmp.lt.u32.totalorder %s354_s18, %s615_s1 }
   0x7   :  { %p360_p2 = pnand %p358_p1, %p355_p0 }
   0x9   :  { %363 = shalt.err (!%p360_p2)
}
   0xa   :  { %s364_s23 = scalar_lea.vmem %s28_s13, 128  ;;  %p369_p4 = scmp.lt.s32.totalorder %s28_s13, %s28_s13 }
   0xb   :  { %p365_p3 = scmp.ne.s32.totalorder %s28_s13, %s364_s23  ;;  %p370_p5 = scmp.lt.s32.totalorder %s364_s23, %s364_s23 }
   0xd   :  { %p371_p6 = por %p370_p5, %p369_p4 }
   0xf   :  { %p372_p7 = pnand %p371_p6, %p365_p3 }
  0x11   :  { %375 = shalt.err (!%p372_p7)
}
  0x12   :  { %30 = dma.hbm_to_vmem [thread:$0]  %s615_s1, 128, %s28_s13, [#allocation6]  }
  0x13   :  { %s376_s28 = scalar_lea.hbm %s614_s0, 256 }
  0x14   :  { %p377_p8 = scmp.ne.s32.totalorder %s614_s0, %s376_s28  ;;  %p380_p9 = scmp.lt.u32.totalorder %s376_s28, %s614_s0 }
  0x16   :  { %p382_p10 = pnand %p380_p9, %p377_p8 }
  0x18   :  { %385 = shalt.err (!%p382_p10)
}
  0x19   :  { %s386_s6 = scalar_lea.vmem %s18_s15, 256  ;;  %p391_p12 = scmp.lt.s32.totalorder %s18_s15, %s18_s15 }
  0x1a   :  { %p387_p11 = scmp.ne.s32.totalorder %s18_s15, %s386_s6  ;;  %p392_p13 = scmp.lt.s32.totalorder %s386_s6, %s386_s6 }
  0x1c   :  { %p393_p0 = por %p392_p13, %p391_p12 }
  0x1e   :  { %p394_p1 = pnand %p393_p0, %p387_p11 }
  0x20   :  { %397 = shalt.err (!%p394_p1)
}
  0x21   :  { %20 = dma.hbm_to_vmem [thread:$0]  %s614_s0, 256, %s18_s15, [#allocation3]  }
  0x22   :  { %s450_s8 = smov [#allocation7]   ;;  %s398_s12 = scalar_lea.hbm %s616_s2, 512 }
  0x23   :  { %s36_s9 = sshll.u32 %s450_s8, 4  ;;  %p399_p2 = scmp.ne.s32.totalorder %s616_s2, %s398_s12  ;;  %s37_s9 = int_to_ptr.vmem [resolvable:$true] %s36_s9 }
  0x24   :  { %p402_p3 = scmp.lt.u32.totalorder %s398_s12, %s616_s2 }
  0x26   :  { %p404_p4 = pnand %p402_p3, %p399_p2 }
  0x28   :  { %407 = shalt.err (!%p404_p4)
}
  0x29   :  { %s408_s18 = scalar_lea.vmem %s37_s9, 512  ;;  %p413_p6 = scmp.lt.s32.totalorder %s37_s9, %s37_s9 }
  0x2a   :  { %p409_p5 = scmp.ne.s32.totalorder %s37_s9, %s408_s18  ;;  %p414_p7 = scmp.lt.s32.totalorder %s408_s18, %s408_s18 }
  0x2c   :  { %p415_p8 = por %p414_p7, %p413_p6 }
  0x2e   :  { %p416_p9 = pnand %p415_p8, %p409_p5 }
  0x30   :  { %419 = shalt.err (!%p416_p9)
}
  0x31   :  { %s451_s0 = smov 256   ;;  %s452_s15 = smov 16  }
  0x32   :  { %42 = dma.hbm_to_vmem [thread:$0]  %s616_s2, 512, %s37_s9, [#allocation6], %s451_s0, %s451_s0, %s452_s15  }
  0x33   :  { %442 = dma.done.wait [#allocation3], 256  }
  0x34   :  { %443 = vsyncadd [#allocation3], 4294967040 }
  0x35   :  { %444 = dma.done.wait [#allocation6], 640  }
  0x36   :  { %445 = vsyncadd [#allocation6], 4294966656  ;;  %v453_v0 = vmov 2   ;;  %v454_v1 = vmov 0   ;;  %v54_v2 = vld [vmem:[#allocation5] sm:$0xff]  ;;  %v526_v3 = vld [vmem:[#allocation2] sm:$0xff]  ;;  %v59_v22 = vlaneseq }
  0x37   :  { %347 = vset.pattern.permute.xlu1 %v453_v0  ;;  %345 = vset.pattern.permute.xlu0 %v454_v1  ;;  %s455_s21 = smov 17   ;;  %v456_v4 = vmov 1   ;;  %v529_v5 = vld [vmem:[#allocation2 + $0x8] sm:$0xff]  ;;  %v457_v6 = vmov 6   ;;  %v458_v7 = vmov 3   ;;  %s459_s2 = smov 15  }
  0x38   :  { %140 = vperm.xlu1 %347, %v54_v2   ;;  %80 = vperm.xlu0 %345, %v54_v2   ;;  %v460_v8 = vmov 4   ;;  %v461_v9 = vmov 5   ;;  %s462_s22 = smov 1   ;;  %s463_s23 = smov 127   ;;  %v464_v10 = vmov 8   ;;  %v466_v11 = vmov 7  }
  0x39   :  { %s465_s24 = smov 113   ;;  %s467_s25 = smov 111   ;;  %v67_v24 = vshrl.u32 %v59_v22, 7  ;;  %v550_v26 = vand.u32 127, %v59_v22 }
  0x3a   :  { %s468_s26 = smov 112   ;;  %v95_v28 = vld [vmem:[#allocation7 + $0x1] ss:$8 sm:$0x3]  ;;  %s469_s27 = smov [#allocation8]  }
  0x3b   :  { %v552_v29 = vsub.s32 0, %v67_v24  ;;  %v554_v30 = vsub.s32 1, %v67_v24  ;;  %vm91_vm0 = vcmp.lt.s32.totalorder %v550_v26, 16  ;;  %v64_v31 = vld [vmem:[#allocation7] ss:$8 sm:$0x3] }
  0x3c   :  { %55 = vrot.lane.b32.xlu1 %v526_v3, %s455_s21  ;;  %346 = vset.pattern.permute.xlu0 %v456_v4  ;;  %v125_v32 = vld [vmem:[#allocation7 + $0x2] ss:$8 sm:$0x3]  ;;  %vm61_vm1 = vcmp.lt.s32.totalorder %v550_v26, 17  ;;  %vm121_vm2 = vcmp.lt.s32.totalorder %v550_v26, 15  ;;  %vm151_vm3 = vcmp.lt.s32.totalorder %v550_v26, 1 }
  0x3d   :  { %110 = vperm.xlu0 %346, %v54_v2   ;;  %351 = vset.pattern.permute.xlu1 %v457_v6  ;;  %v100_v33 = vrot.slane %v95_v28, %v552_v29  ;;  %v104_v34 = vrot.slane %v95_v28, %v554_v30  ;;  %v69_v39 = vrot.slane %v64_v31, %v552_v29  ;;  %v155_v42 = vld [vmem:[#allocation7 + $0x3] ss:$8 sm:$0x3]  ;;  %v193_v62 = vld [vmem:[#allocation7 + $0x5] ss:$8 sm:$0x3] }
  0x3e   :  { %v73_v40 = vrot.slane %v64_v31, %v554_v30  ;;  %v130_v41 = vrot.slane %v125_v32, %v552_v29  ;;  %v134_v45 = vrot.slane %v125_v32, %v554_v30  ;;  %v160_v51 = vrot.slane %v155_v42, %v552_v29  ;;  %v253_v28 = vld [vmem:[#allocation7 + $0x7] ss:$8 sm:$0x3]  ;;  %s313_s28 = sshll.u32 %s469_s27, 4  ;;  %s314_s28 = int_to_ptr.vmem [resolvable:$true] %s313_s28 }
  0x3f   :  { %v164_v52 = vrot.slane %v155_v42, %v554_v30  ;;  %vm189_vm4 = vcmp.lt.s32.totalorder %v550_v26, 127  ;;  %vm219_vm5 = vcmp.lt.s32.totalorder %v550_v26, 113  ;;  %vm249_vm6 = vcmp.lt.s32.totalorder %v550_v26, 112  ;;  %s420_s29 = scalar_lea.vmem %s314_s28, 256  ;;  %p425_p11 = scmp.lt.s32.totalorder %s314_s28, %s314_s28 }
  0x40   :  { %57 = vrot.lane.b32.xlu1 %v529_v5, %s455_s21  ;;  %vm279_vm7 = vcmp.lt.s32.totalorder %v550_v26, 111  ;;  %p421_p10 = scmp.ne.s32.totalorder %s314_s28, %s420_s29  ;;  %p426_p12 = scmp.lt.s32.totalorder %s420_s29, %s420_s29 }
  0x41   :  { %87 = vrot.lane.b32.xlu0 %v526_v3, %s452_s15 }
  0x42   :  { %348 = vset.pattern.permute.xlu0 %v458_v7  ;;  %p427_p13 = por %p426_p12, %p425_p11 }
  0x44   :  { %89 = vrot.lane.b32.xlu1 %v529_v5, %s452_s15  ;;  %p428_p0 = pnand %p427_p13, %p421_p10 }
  0x45   :  { %170 = vperm.xlu0 %348, %v54_v2  }
  0x48   :  { %117 = vrot.lane.b32.xlu1 %v526_v3, %s459_s2 }
  0x49   :  { %349 = vset.pattern.permute.xlu0 %v460_v8  ;;  %v198_v8 = vrot.slane %v193_v62, %v552_v29 }
  0x4a   :  { %178 = vperm.xlu0 %349, %v54_v2  }
  0x4c   :  { %119 = vrot.lane.b32.xlu1 %v529_v5, %s459_s2 }
  0x4e   :  { %350 = vset.pattern.permute.xlu0 %v461_v9  ;;  %v223_v9 = vld [vmem:[#allocation7 + $0x6] ss:$8 sm:$0x3] }
  0x4f   :  { %208 = vperm.xlu0 %350, %v54_v2  }
  0x50   :  { %147 = vrot.lane.b32.xlu1 %v526_v3, %s462_s22 }
  0x53   :  { %187 = vrot.lane.b32.xlu0 %v529_v5, %s463_s23 }
  0x54   :  { %149 = vrot.lane.b32.xlu1 %v529_v5, %s462_s22  ;;  %353 = vset.pattern.permute.xlu0 %v464_v10 }
  0x57   :  { %215 = vrot.lane.b32.xlu0 %v526_v3, %s465_s24 }
  0x58   :  { %238 = vperm.xlu1 %351, %v54_v2  }
  0x5b   :  { %298 = vperm.xlu0 %353, %v54_v2  }
  0x5c   :  { %185 = vrot.lane.b32.xlu1 %v526_v3, %s463_s23 }
  0x5d   :  { %352 = vset.pattern.permute.xlu1 %v466_v11 }
  0x5f   :  { %275 = vrot.lane.b32.xlu0 %v526_v3, %s467_s25 }
  0x60   :  { %268 = vperm.xlu1 %352, %v54_v2  }
  0x64   :  { %217 = vrot.lane.b32.xlu1 %v529_v5, %s465_s24 }
  0x68   :  { %245 = vrot.lane.b32.xlu1 %v526_v3, %s468_s26 }
  0x6c   :  { %247 = vrot.lane.b32.xlu1 %v529_v5, %s468_s26 }
  0x70   :  { %277 = vrot.lane.b32.xlu1 %v529_v5, %s467_s25 }
  0xb7   :  { %v141_v12 = vpop.permute.xlu1 %140  ;;  %v81_v13 = vpop.permute.xlu0 %80 }
  0xbb   :  { %v56_v14 = vpop.permute.xlu1 %55 }
  0xbc   :  { %v111_v16 = vpop.permute.xlu0 %110 }
  0xbf   :  { %v58_v15 = vpop.permute.xlu1 %57 }
  0xc0   :  { %v88_v18 = vpop.permute.xlu0 %87  ;;  %v62_v43 = vsel %vm61_vm1, %v56_v14, %v58_v15  ;;  %v63_v44 = vsel %vm61_vm1, %v58_v15, %v56_v14  ;;  %v202_v15 = vrot.slane %v193_v62, %v554_v30 }
  0xc1   :  { %v76_v53 = vmul.f32 %v69_v39, %v63_v44  ;;  %v77_v54 = vmul.f32 %v73_v40, %v62_v43  ;;  %v283_v40 = vld [vmem:[#allocation7 + $0x10] ss:$8 sm:$0x3]  ;;  %v258_v43 = vrot.slane %v253_v28, %v552_v29  ;;  %v262_v44 = vrot.slane %v253_v28, %v554_v30 }
  0xc3   :  { %v90_v17 = vpop.permute.xlu1 %89  ;;  %v83_v2 = vmul.f32 %v81_v13, %v76_v53  ;;  %v84_v4 = vmul.f32 %v81_v13, %v77_v54 }
  0xc4   :  { %v546_v20 = vpop.permute.xlu0 %170  ;;  %v92_v37 = vsel %vm91_vm0, %v88_v18, %v90_v17  ;;  %v93_v38 = vsel %vm91_vm0, %v90_v17, %v88_v18 }
  0xc5   :  { %v107_v46 = vmul.f32 %v100_v33, %v93_v38  ;;  %v108_v47 = vmul.f32 %v104_v34, %v92_v37 }
  0xc7   :  { %v118_v19 = vpop.permute.xlu1 %117  ;;  %v113_v60 = vmul.f32 %v111_v16, %v107_v46  ;;  %v114_v61 = vmul.f32 %v111_v16, %v108_v47 }
  0xc9   :  { %v548_v25 = vpop.permute.xlu0 %178  ;;  %v115_v10 = vadd.f32 %v113_v60, %v83_v2  ;;  %v116_v11 = vadd.f32 %v114_v61, %v84_v4 }
  0xca   :  { %v182_v37 = vmul.f32 %v548_v25, %v529_v5  ;;  %v292_v5 = vrot.slane %v283_v40, %v554_v30 }
  0xcb   :  { %v120_v21 = vpop.permute.xlu1 %119 }
  0xcc   :  { %v122_v48 = vsel %vm121_vm2, %v118_v19, %v120_v21  ;;  %v123_v49 = vsel %vm121_vm2, %v120_v21, %v118_v19  ;;  %v228_v21 = vrot.slane %v223_v9, %v552_v29 }
  0xcd   :  { %v137_v58 = vmul.f32 %v130_v41, %v123_v49  ;;  %v138_v59 = vmul.f32 %v134_v45, %v122_v48 }
  0xce   :  { %v560_v35 = vpop.permute.xlu0 %208 }
  0xcf   :  { %v148_v23 = vpop.permute.xlu1 %147  ;;  %v143_v6 = vmul.f32 %v141_v12, %v137_v58  ;;  %v144_v7 = vmul.f32 %v141_v12, %v138_v59  ;;  %v232_v12 = vrot.slane %v223_v9, %v554_v30 }
  0xd1   :  { %v145_v22 = vadd.f32 %v143_v6, %v115_v10 }
  0xd2   :  { %v188_v57 = vpop.permute.xlu0 %187 }
  0xd3   :  { %v150_v27 = vpop.permute.xlu1 %149 }
  0xd4   :  { %v152_v55 = vsel %vm151_vm3, %v148_v23, %v150_v27  ;;  %v153_v56 = vsel %vm151_vm3, %v150_v27, %v148_v23  ;;  %v146_v23 = vadd.f32 %v144_v7, %v116_v11 }
  0xd5   :  { %v167_v0 = vmul.f32 %v160_v51, %v153_v56  ;;  %v168_v1 = vmul.f32 %v164_v52, %v152_v55 }
  0xd6   :  { %v216_v14 = vpop.permute.xlu0 %215 }
  0xd7   :  { %v562_v36 = vpop.permute.xlu1 %238  ;;  %v173_v17 = vmul.f32 %v546_v20, %v167_v0  ;;  %v174_v18 = vmul.f32 %v546_v20, %v168_v1  ;;  %v181_v20 = vmul.f32 %v548_v25, %v526_v3  ;;  %v288_v3 = vrot.slane %v283_v40, %v552_v29 }
  0xd9   :  { %v175_v38 = vadd.f32 %v173_v17, %v145_v22  ;;  %v176_v39 = vadd.f32 %v174_v18, %v146_v23 }
  0xda   :  { %v299_v34 = vpop.permute.xlu0 %298 }
  0xdb   :  { %v186_v50 = vpop.permute.xlu1 %185  ;;  %v183_v25 = vadd.f32 %v181_v20, %v175_v38  ;;  %v184_v48 = vadd.f32 %v182_v37, %v176_v39 }
  0xdc   :  { %v190_v13 = vsel %vm189_vm4, %v186_v50, %v188_v57  ;;  %v191_v19 = vsel %vm189_vm4, %v188_v57, %v186_v50 }
  0xdd   :  { %v205_v31 = vmul.f32 %v198_v8, %v190_v13  ;;  %v206_v32 = vmul.f32 %v202_v15, %v191_v19 }
  0xdf   :  { %v269_v63 = vpop.permute.xlu1 %268  ;;  %v211_v45 = vmul.f32 %v560_v35, %v205_v31  ;;  %v212_v46 = vmul.f32 %v560_v35, %v206_v32  ;;  %v276_v35 = vpop.permute.xlu0 %275 }
  0xe1   :  { %v213_v55 = vadd.f32 %v211_v45, %v183_v25  ;;  %v214_v56 = vadd.f32 %v212_v46, %v184_v48 }
  0xe3   :  { %v218_v16 = vpop.permute.xlu1 %217 }
  0xe4   :  { %v220_v24 = vsel %vm219_vm5, %v216_v14, %v218_v16  ;;  %v221_v27 = vsel %vm219_vm5, %v218_v16, %v216_v14 }
  0xe5   :  { %v235_v41 = vmul.f32 %v228_v21, %v220_v24  ;;  %v236_v42 = vmul.f32 %v232_v12, %v221_v27 }
  0xe7   :  { %v246_v33 = vpop.permute.xlu1 %245  ;;  %v241_v51 = vmul.f32 %v562_v36, %v235_v41  ;;  %v242_v52 = vmul.f32 %v562_v36, %v236_v42 }
  0xe9   :  { %v243_v60 = vadd.f32 %v241_v51, %v213_v55  ;;  %v244_v61 = vadd.f32 %v242_v52, %v214_v56 }
  0xeb   :  { %v248_v47 = vpop.permute.xlu1 %247 }
  0xec   :  { %v250_v49 = vsel %vm249_vm6, %v246_v33, %v248_v47  ;;  %v251_v50 = vsel %vm249_vm6, %v248_v47, %v246_v33 }
  0xed   :  { %v265_v53 = vmul.f32 %v258_v43, %v250_v49  ;;  %v266_v54 = vmul.f32 %v262_v44, %v251_v50 }
  0xef   :  { %v271_v29 = vmul.f32 %v269_v63, %v265_v53  ;;  %v272_v57 = vmul.f32 %v269_v63, %v266_v54  ;;  %v278_v30 = vpop.permute.xlu1 %277 }
  0xf0   :  { %v280_v58 = vsel %vm279_vm7, %v276_v35, %v278_v30  ;;  %v281_v59 = vsel %vm279_vm7, %v278_v30, %v276_v35 }
  0xf1   :  { %v295_v62 = vmul.f32 %v288_v3, %v280_v58  ;;  %v296_v0 = vmul.f32 %v292_v5, %v281_v59  ;;  %v273_v36 = vadd.f32 %v271_v29, %v243_v60  ;;  %v274_v1 = vadd.f32 %v272_v57, %v244_v61 }
  0xf3   :  { %v301_v2 = vmul.f32 %v299_v34, %v295_v62  ;;  %v302_v4 = vmul.f32 %v299_v34, %v296_v0 }
  0xf5   :  { %v303_v6 = vadd.f32 %v301_v2, %v273_v36  ;;  %v304_v7 = vadd.f32 %v302_v4, %v274_v1 }
  0xf7   :  { %305 = vst [vmem:[#allocation8] sm:$0xff] %v303_v6  ;;  %306 = vst [vmem:[#allocation8 + $0x8] sm:$0xff] %v304_v7 }
  0xf8   :  { %431 = shalt.err (!%p428_p0)
}
  0xf9   :  { %s432_s5 = scalar_lea.hbm %s617_s3, 256 }
  0xfa   :  { %p433_p1 = scmp.ne.s32.totalorder %s617_s3, %s432_s5  ;;  %p436_p2 = scmp.lt.u32.totalorder %s432_s5, %s617_s3 }
  0xfc   :  { %p438_p3 = pnand %p436_p2, %p433_p1 }
  0xfe   :  { %441 = shalt.err (!%p438_p3)
}
  0xff   :  { %316 = dma.vmem_to_hbm [thread:$0]  %s314_s28, 256, %s617_s3, [#allocation4]  }
 0x100   :  { %446 = dma.done.wait [#allocation4], 256  }
 0x101   :  { %447 = vsyncadd [#allocation4], 4294967040 }
 0x102   :  { %320 = vsyncpa [#allocation3], 1 }
 0x103   :  { %321 = vsyncpa [#allocation6], 1 }
 0x104   :  { %322 = vsyncpa [#allocation4], 1 }

</bundles_post_ra>
